<compile_context>
chip_gen: v6e
topology: v6e:2x2x1
jax: 0.10.0
libtpu: 0.0.40
codegen_flags: <defaults>
</compile_context>

<pallas_src>
import math
import jax
import jax.numpy as jnp
from jax.experimental import pallas as pl
from jax.experimental.pallas import tpu as pltpu


def make_positional_encoding(d_model: int, max_seq_length: int = 5000) -> jnp.ndarray:
    """PE table identical to the PyTorch __init__ buffer; shape (max_seq_length, d_model).
    (Like the PyTorch module, assumes even d_model.)"""
    position = jnp.arange(max_seq_length, dtype=jnp.float32)[:, None]            # (L, 1)
    div_term = jnp.exp(
        jnp.arange(0, d_model, 2, dtype=jnp.float32) * (-math.log(10000.0) / d_model)
    )                                                                             # (d_model//2,)
    angles = position * div_term                                                  # (L, d_model//2)
    pe = jnp.zeros((max_seq_length, d_model), dtype=jnp.float32)
    pe = pe.at[:, 0::2].set(jnp.sin(angles))
    pe = pe.at[:, 1::2].set(jnp.cos(angles))
    return pe


def _pe_add_kernel(x_ref, pe_ref, o_ref):
    # Batch dim is squeezed by the BlockSpec: plain (rows, cols) tile add.
    # Add in float32 (PE buffer stays f32, as in the PyTorch module), store in x dtype.
    o_ref[...] = (x_ref[...].astype(jnp.float32) + pe_ref[...]).astype(o_ref.dtype)


def _choose_block_rows(total_rows: int, bytes_per_row: int,
                       target_bytes: int = 6 * 1024 * 1024) -> int:
    """Multiple-of-8 row count so that (x + out + PE) blocks total <= target_bytes.
    ~6 MiB per buffer set -> ~12 MiB double-buffered: fits every generation's
    default scoped VMEM limit (16/32/32 MiB on v5e/v6e/v7x)."""
    rows = target_bytes // max(bytes_per_row, 1)
    rows = max(8, (rows // 8) * 8)
    cap = max(8, ((total_rows + 7) // 8) * 8)   # never request more rows than needed
    return min(rows, cap)


def _pe_add_tiled(x3: jnp.ndarray, pe2: jnp.ndarray, block_R: int) -> jnp.ndarray:
    """x3: (B, R, C);  pe2: (>=R usable rows, C) float32.  Returns x3 + pe2 rowwise."""
    B, R, C = x3.shape
    n_r = pl.cdiv(R, block_R)
    # Parallel axis chosen dynamically: row tiles when there are several (keeps PE
    # residency per core on v7x), otherwise batch so both TensorCores still get work.
    dims = ("parallel", "arbitrary") if n_r > 1 else ("arbitrary", "parallel")
    return pl.pallas_call(
        _pe_add_kernel,
        out_shape=jax.ShapeDtypeStruct((B, R, C), x3.dtype),
        grid_spec=pltpu.PrefetchScalarGridSpec(
            num_scalar_prefetch=0,
            grid=(n_r, B),                      # row tiles OUTER, batch INNER
            in_specs=[
                pl.BlockSpec((None, block_R, C), lambda r, b: (b, r, 0)),  # x, batch squeezed
                pl.BlockSpec((block_R, C), lambda r, b: (r, 0)),           # PE: constant over inner b
            ],
            out_specs=pl.BlockSpec((None, block_R, C), lambda r, b: (b, r, 0)),
        ),
        compiler_params=pltpu.CompilerParams(dimension_semantics=dims),
    )(x3, pe2)


def positional_encoder_forward(x: jnp.ndarray, pe_full: jnp.ndarray) -> jnp.ndarray:
    """
    x:       (batch, seq_length, d_model)
    pe_full: (max_seq_length, d_model) float32 PE table
    returns: (batch, seq_length, d_model) = x + pe_full[:seq_length]  (in x.dtype)
    """
    B, S, D = x.shape
    assert S <= pe_full.shape[0], "seq_length exceeds max_seq_length"
    itemsize = jnp.dtype(x.dtype).itemsize

    if D % 128 == 0:
        # Natural layout: tile the sequence axis; pass the FULL PE table (no
        # wrapper-side slice/astype copy) and offset it via the index_map.
        C, R = D, S
        x_k, pe_k = x, pe_full
        post = lambda o: o
    elif (S * D) % 128 == 0:
        # Lane-sparse d_model: re-view each batch row as (R, 128) so stores are
        # full-lane.  Only the S used PE rows are materialized (contiguous reshape).
        C = 128
        R = (S * D) // 128
        x_k = x.reshape(B, R, C)
        pe_k = pe_full[:S].reshape(R, C)
        post = lambda o: o.reshape(B, S, D)
    else:
        # Awkward (S, D): pad d_model up to the next lane multiple so output stores
        # stay unmasked, then slice the padding back off.  Rare fallback path.
        C = ((D + 127) // 128) * 128
        R = S
        x_k = jnp.pad(x, ((0, 0), (0, 0), (0, C - D)))
        pe_k = jnp.pad(pe_full[:S], ((0, 0), (0, C - D)))
        post = lambda o: o[..., :D]

    # Per-row VMEM footprint: x block + out block (x dtype) + PE block (float32).
    bytes_per_row = C * (2 * itemsize + 4)
    block_R = _choose_block_rows(R, bytes_per_row)
    out = _pe_add_tiled(x_k, pe_k, block_R)
    return post(out)


if __name__ == "__main__":
    # Case 1: small d_model (lane-dense flattened path).
    batch, seq_len, d_model, max_len = 2, 8, 32, 64
    pe_full = make_positional_encoding(d_model, max_len)
    x = jax.random.normal(jax.random.PRNGKey(0), (batch, seq_len, d_model), dtype=jnp.float32)
    ref = x + pe_full[None, :seq_len, :]
    out = jax.block_until_ready(positional_encoder_forward(x, pe_full))
    assert out.shape == (batch, seq_len, d_model)
    assert jnp.allclose(out, ref, atol=1e-6), "mismatch vs reference (small d_model)"

    # Case 2: lane-aligned d_model, seq not block-aligned (masked partial edge block).
    b2, s2, d2 = 2, 12, 128
    pe2 = make_positional_encoding(d2, 64)
    x2 = jax.random.normal(jax.random.PRNGKey(1), (b2, s2, d2), dtype=jnp.float32)
    ref2 = x2 + pe2[None, :s2, :]
    out2 = jax.block_until_ready(positional_encoder_forward(x2, pe2))
    assert jnp.allclose(out2, ref2, atol=1e-6), "mismatch vs reference (d_model=128)"

    # Case 3: awkward d_model / seq (lane-padding fallback path).
    b3, s3, d3 = 2, 7, 96
    pe3 = make_positional_encoding(d3, 32)
    x3 = jax.random.normal(jax.random.PRNGKey(2), (b3, s3, d3), dtype=jnp.float32)
    ref3 = x3 + pe3[None, :s3, :]
    out3 = jax.block_until_ready(positional_encoder_forward(x3, pe3))
    assert jnp.allclose(out3, ref3, atol=1e-6), "mismatch vs reference (d_model=96, seq=7)"

    print("KERNEL_OK")
</pallas_src>

<mosaic_0001>
module attributes {stable_mosaic.version = 11 : i64} {
  func.func @_pe_add_kernel(%arg0: i32, %arg1: i32, %arg2: memref<1x8x128xf32, #tpu.memory_space<vmem>>, %arg3: memref<8x128xf32, #tpu.memory_space<vmem>>, %arg4: memref<1x8x128xf32, #tpu.memory_space<vmem>>) attributes {dimension_semantics = [#tpu.dimension_semantics<arbitrary>, #tpu.dimension_semantics<parallel>], iteration_bounds = array<i64: 1, 2>, scalar_prefetch = 0 : i64, scratch_operands = 0 : i64, tpu.core_type = #tpu.core_type<tc>, window_params = [{transform_indices = @transform_0, window_bounds = array<i64: 1, 8, 128>}, {transform_indices = @transform_1, window_bounds = array<i64: 8, 128>}, {transform_indices = @transform_2, window_bounds = array<i64: 1, 8, 128>}]} {
    %c0 = arith.constant 0 : index
    %c0_0 = arith.constant 0 : index
    %c0_1 = arith.constant 0 : index
    %0 = vector.load %arg2[%c0, %c0_0, %c0_1] : memref<1x8x128xf32, #tpu.memory_space<vmem>>, vector<1x8x128xf32>
    %1 = vector.shape_cast %0 : vector<1x8x128xf32> to vector<8x128xf32>
    %c0_2 = arith.constant 0 : index
    %c0_3 = arith.constant 0 : index
    %2 = vector.load %arg3[%c0_2, %c0_3] : memref<8x128xf32, #tpu.memory_space<vmem>>, vector<8x128xf32>
    %3 = arith.addf %1, %2 : vector<8x128xf32>
    %c0_4 = arith.constant 0 : index
    %c0_5 = arith.constant 0 : index
    %c0_6 = arith.constant 0 : index
    %4 = vector.load %arg4[%c0_4, %c0_5, %c0_6] : memref<1x8x128xf32, #tpu.memory_space<vmem>>, vector<1x8x128xf32>
    %5 = vector.shape_cast %4 : vector<1x8x128xf32> to vector<8x128xf32>
    %6 = vector.shape_cast %3 : vector<8x128xf32> to vector<1x8x128xf32>
    tpu.vector_store %arg4[%c0_4, %c0_5, %c0_6], %6 {strides = array<i32>} : memref<1x8x128xf32, #tpu.memory_space<vmem>>, vector<1x8x128xf32>,
    return
  }
  func.func @transform_0(%arg0: i32, %arg1: i32) -> (i32, i32, i32) {
    %c0_i32 = arith.constant 0 : i32
    %c0_i32_0 = arith.constant 0 : i32
    return %arg1, %arg0, %c0_i32 : i32, i32, i32
  }
  func.func @transform_1(%arg0: i32, %arg1: i32) -> (i32, i32) {
    %c0_i32 = arith.constant 0 : i32
    %c0_i32_0 = arith.constant 0 : i32
    return %arg0, %c0_i32 : i32, i32
  }
  func.func @transform_2(%arg0: i32, %arg1: i32) -> (i32, i32, i32) {
    %c0_i32 = arith.constant 0 : i32
    %c0_i32_0 = arith.constant 0 : i32
    return %arg1, %arg0, %c0_i32 : i32, i32, i32
  }
}

</mosaic_0001>

<bundles_post_ra>
// kernel: tpu_custom_call.1
= control target key start
LH: loop header
LB: loop body
LE: loop exit
PB: predicated region body
PF: predicated region fallthrough
CT: control target
= control target key end

     0   :  { %7 = vsyncpa [#allocation3], 0  ;;  %s712_s0 = inlined_call_operand.hbm [shape: f32[2,2,128], index: 0, kind: input, shape index: {}]   ;;  %s713_s1 = inlined_call_operand.hbm [shape: f32[2,128], index: 1, kind: input, shape index: {}]   ;;  %s714_s2 = inlined_call_operand.hbm [shape: f32[2,2,128], index: 2, kind: output, shape index: {}]  }
   0x1   :  { %9 = vsyncpa [#allocation3 + $0x1], 0 }
   0x2   :  { %10 = vsyncpa [#allocation6], 0 }
   0x3   :  { %11 = vsyncpa [#allocation4], 0 }
   0x4   :  { %13 = vsyncpa [#allocation4 + $0x1], 0  ;;  %s567_s9 = smov 0   ;;  %s569_s10 = smov 0  }
   0x5   :  { %s571_s11 = smov 0   ;;  %s573_s12 = smov 0  }
   0x6   :  { %s575_s13 = smov 0   ;;  %s577_s14 = smov 0  }
   0x7 LB: > { %s598_s15 = sadd.s32 4294967295, %s541_s14   ;;  %s340_s16 = sadd.s32 4294967294, %s541_s14   ;;  %s541_s14 = sphi %s577_s14, %s19_s14   ;;  %s537_s13 = sphi %s575_s13, %s724_s13   ;;  %s533_s12 = sphi %s573_s12, %s723_s12   ;;  %s529_s11 = sphi %s571_s11, %s722_s11   ;;  %s525_s10 = sphi %s569_s10, %s721_s10   ;;  %s521_s9 = sphi %s567_s9, %s720_s9  }
   0x8   : > { %s28_s17 = sadd.s32 1, %s537_s13  ;;  %s40_s18 = sadd.s32 1, %s529_s11 }
   0x9   : > { %p29_p0 = scmp.ge.s32.totalorder %s28_s17, 2  ;;  %p47_p1 = scmp.ne.s32.totalorder %s529_s11, %s525_s10 }
   0xa   : > { %p48_p2 = scmp.eq.s32.totalorder %s541_s14, 0  ;;  %p53_p3 = scmp.ne.s32.totalorder %s525_s10, %s521_s9 }
   0xb   : > { %s726_s17 = smov (%p29_p0, %s28_s17), 0  ;;  %p54_p5 = scmp.eq.s32.totalorder %s598_s15, 0 }
   0xc   : > { %p610_p4 = por %p48_p2, %p47_p1  ;;  %s35_s20 = ssub.s32 %s537_s13, %s726_s17 }
   0xd   : > { %p105_p6 = scmp.eq.s32.totalorder %s598_s15, 1  ;;  %p38_p7 = scmp.eq.s32.totalorder %s35_s20, 0 }
   0xe   : > { %p620_p8 = por %p54_p5, %p53_p3  ;;  %p111_p10 = scmp.eq.s32.totalorder %s340_s16, 1 }
   0xf   : > { %p624_p9 = por %p105_p6, %p47_p1  ;;  %p341_p12 = scmp.ge.s32.totalorder %s541_s14, 1 }
  0x10   : > { %s629_s23 = scalar_select %p38_p7, %s529_s11, %s40_s18  }
  0x11   : > { %p631_p11 = por %p111_p10, %p53_p3  ;;  %p118_p13 = scmp.lt.s32.totalorder %s541_s14, 3 }
  0x13   : > { %p637_p0 = pnand %p341_p12, %p118_p13 }
  0x14   : > { %p342_p1 = scmp.ne.s32.totalorder (!%p637_p0), %s598_s15, 0 }
  0x15   : > { %122 = sbr.rel (%p637_p0) target bundleno = 44 (0x2c), region = 12 }
  0x1a   : > { %126 = sbr.rel (%p342_p1) target bundleno = 44 (0x2c), region = 16 }
  0x1f   : > { %132 = vsyncadd [#allocation6], 96  ;;  %s543_s26 = smov [#allocation5]  }
  0x20   : > { %s137_s27 = sshll.u32 %s543_s26, 4  ;;  %s138_s27 = int_to_ptr.vmem [resolvable:$true] %s137_s27 }
  0x21   : > { %s427_s28 = scalar_lea.vmem %s138_s27, 32  ;;  %s431_s29 = scalar_lea.vmem %s138_s27, 128 }
  0x22   : > { %p428_p2 = scmp.ne.s32.totalorder %s138_s27, %s427_s28  ;;  %p432_p3 = scmp.lt.s32.totalorder %s138_s27, %s138_s27 }
  0x23   : > { %p433_p6 = scmp.lt.s32.totalorder %s431_s29, %s427_s28 }
  0x25   : > { %p434_p7 = por %p433_p6, %p432_p3 }
  0x27   : > { %p435_p10 = pnand %p434_p7, %p428_p2 }
  0x29   : > { %438 = shalt.err (!%p435_p10)
}
  0x2a   : > { %s544_s30 = smov 32   ;;  %s545_s3 = smov 2  }
  0x2b   : > { %143 = dma.hbm_to_vmem [thread:$0]  %s713_s1, 32, %s138_s27, [#allocation6], %s544_s30, %s544_s30, %s545_s3  }
  0x2c PF: > { %p343_p12 = scmp.ge.s32.totalorder %s541_s14, 2 }
  0x2e   : > { %147 = sbr.rel (%p343_p12) target bundleno = 70 (0x46), region = 20 }
  0x33   : > { %150 = sbr.rel (!%p610_p4) target bundleno = 70 (0x46), region = 24  ;;  %s151_s6 = sand.u32 (%p610_p4), 1, %s529_s11  }
  0x34   : > { %s344_s7 = sshll.u32 (%p610_p4), %s151_s6, 3  ;;  %s152_s8 = scalar_lea.sflag (%p610_p4), [#allocation3], %s151_s6 }
  0x35   : > { %s155_s16 = scalar_lea.vmem (%p610_p4), [#allocation2], %s344_s7 }
  0x38   : > { %161 = vsyncadd %s152_s8, 96  ;;  %s345_s18 = sshll.u32 %s537_s13, 5  ;;  %s167_s20 = sshll.u32 %s155_s16, 4  ;;  %s168_s20 = int_to_ptr.vmem [resolvable:$true] %s167_s20 }
  0x39   : > { %s165_s28 = scalar_lea.hbm %s712_s0, %s345_s18  ;;  %s449_s29 = scalar_lea.vmem %s168_s20, 32 }
  0x3a   : > { %p450_p13 = scmp.ne.s32.totalorder %s168_s20, %s449_s29  ;;  %s546_s30 = smov [#allocation2]  }
  0x3b   : > { %s451_s3 = sshll.u32 %s546_s30, 4  ;;  %s452_s3 = int_to_ptr.vmem [resolvable:$false] %s451_s3 }
  0x3c   : > { %s453_s19 = scalar_lea.vmem %s452_s3, 256  ;;  %p454_p4 = scmp.lt.s32.totalorder %s168_s20, %s452_s3 }
  0x3d   : > { %p455_p1 = scmp.lt.s32.totalorder %s453_s19, %s449_s29 }
  0x3f   : > { %p456_p2 = por %p455_p1, %p454_p4 }
  0x41   : > { %p457_p3 = pnand %p456_p2, %p450_p13 }
  0x43   : > { %460 = shalt.err (!%p457_p3)
}
  0x44   : > { %s547_s4 = smov 32   ;;  %s548_s5 = smov 2  }
  0x45   : > { %173 = dma.hbm_to_vmem [thread:$0]  %s165_s28, 32, %s168_s20, %s152_s8, %s547_s4, %s547_s4, %s548_s5  }
  0x46 PF: > { %179 = sbr.rel (%p637_p0) target bundleno = 107 (0x6b), region = 28  ;;  %s660_s6 = sand.u32 (!%p637_p0), 1, %s525_s10  }
  0x47   : > { %s347_s7 = sshll.u32 (!%p637_p0), %s660_s6, 3  ;;  %s182_s16 = scalar_lea.sflag (!%p637_p0), [#allocation3], %s660_s6 }
  0x48   : > { %s185_s18 = scalar_lea.vmem (!%p637_p0), [#allocation2], %s347_s7 }
  0x4b   : > { %508 = dma.done.wait (%p620_p8), %s182_s16, 128  }
  0x4c   : > { %510 = vsyncadd (%p620_p8), %s182_s16, 4294967168 }
  0x4d   : > { %512 = dma.done.wait (%p54_p5), [#allocation6], 128  }
  0x4e   : > { %514 = vsyncadd (%p54_p5), [#allocation6], 4294967168  ;;  %v219_v0 = vld [vmem:[%s185_s18] sm:$0xff]  ;;  %v220_v1 = vld [vmem:[#allocation5] sm:$0xff]  ;;  %s209_s25 = scalar_lea.vmem [#allocation7], %s347_s7  ;;  %s224_s8 = scalar_lea.sflag [#allocation4], %s660_s6 }
  0x4f   : > { %v221_v2 = vadd.f32 %v220_v1, %v219_v0  ;;  %230 = sbr.rel (!%p624_p9) target bundleno = 107 (0x6b), region = 40 }
  0x51   : > { %222 = vst [vmem:[%s209_s25] sm:$0xff] %v221_v2 }
  0x54   : > { %236 = vsyncadd %s224_s8, 96  ;;  %s351_s21 = sshll.u32 %s533_s12, 5  ;;  %s242_s20 = sshll.u32 %s209_s25, 4  ;;  %s243_s20 = int_to_ptr.vmem [resolvable:$true] %s242_s20 }
  0x55   : > { %s240_s15 = scalar_lea.hbm %s714_s2, %s351_s21  ;;  %s461_s28 = scalar_lea.vmem %s243_s20, 32 }
  0x56   : > { %p462_p5 = scmp.ne.s32.totalorder %s243_s20, %s461_s28  ;;  %s549_s29 = smov [#allocation7]  }
  0x57   : > { %s463_s30 = sshll.u32 %s549_s29, 4  ;;  %s464_s30 = int_to_ptr.vmem [resolvable:$false] %s463_s30 }
  0x58   : > { %s465_s3 = scalar_lea.vmem %s464_s30, 256  ;;  %p466_p8 = scmp.lt.s32.totalorder %s243_s20, %s464_s30 }
  0x59   : > { %p467_p0 = scmp.lt.s32.totalorder %s465_s3, %s461_s28 }
  0x5b   : > { %p468_p9 = por %p467_p0, %p466_p8 }
  0x5d   : > { %p469_p6 = pnand %p468_p9, %p462_p5 }
  0x5f   : > { %472 = shalt.err (!%p469_p6)
}
  0x60   : > { %s473_s22 = scalar_lea.hbm %s240_s15, 32  ;;  %s475_s4 = scalar_lea.hbm %s714_s2, 64 }
  0x61   : > { %p474_p7 = scmp.ne.s32.totalorder %s240_s15, %s473_s22  ;;  %p476_p10 = scmp.lt.s32.totalorder %s240_s15, %s714_s2 }
  0x62   : > { %p477_p13 = scmp.lt.s32.totalorder %s475_s4, %s473_s22 }
  0x64   : > { %p478_p4 = por %p477_p13, %p476_p10 }
  0x66   : > { %p479_p1 = pnand %p478_p4, %p474_p7 }
  0x68   : > { %482 = shalt.err (!%p479_p1)
}
  0x69   : > { %s550_s16 = smov 32   ;;  %s551_s18 = smov 2  }
  0x6a   : > { %248 = dma.vmem_to_hbm [thread:$0]  %s243_s20, 32, %s240_s15, %s224_s8, %s550_s16, %s550_s16, %s551_s18  }
  0x6b PF: > { %s257_s25 = sand.u32 1, %s521_s9   ;;  %p359_p2 = pnand %p343_p12, %p631_p11 }
  0x6c   : > { %s258_s21 = scalar_lea.sflag [#allocation4], %s257_s25 }
  0x6d   : > { %p360_p3 = pneg %p359_p2 }
  0x6f   : > { %516 = dma.done.wait (%p360_p3), %s258_s21, 128  }
  0x70   : > { %518 = vsyncadd (%p360_p3), %s258_s21, 4294967168  ;;  %s19_s14 = sadd.s32 1, %s541_s14   ;;  %s720_s9 = smov %s525_s10 }
  0x71   : > { %p16_p5 = scmp.ge.s32.totalorder %s19_s14, 4   ;;  %s721_s10 = smov %s529_s11 }
  0x72   : > { %s722_s11 = smov %s629_s23  ;;  %s723_s12 = smov %s537_s13 }
  0x73   : > { %s724_s13 = smov %s726_s17  ;;  %18 = sbr.rel (!%p16_p5) target bundleno = 7 (0x7), region = 78 }
  0x78   :  { %263 = vsyncpa [#allocation3], 1 }
  0x79   :  { %265 = vsyncpa [#allocation3 + $0x1], 1 }
  0x7a   :  { %266 = vsyncpa [#allocation6], 1 }
  0x7b   :  { %267 = vsyncpa [#allocation4], 1 }
  0x7c   :  { %269 = vsyncpa [#allocation4 + $0x1], 1 }

</bundles_post_ra>
